<compile_context>
chip_gen: v6e
topology: v6e:2x2x1
jax: 0.10.0
libtpu: 0.0.40
codegen_flags: <defaults>
</compile_context>

<pallas_src>
import jax
import jax.numpy as jnp
from jax.experimental import pallas as pl
from jax.experimental.pallas import tpu as pltpu


def _round_up(n, m):
    return ((n + m - 1) // m) * m


HID_PI = 800
HID_V = 600
HID_PI_PAD = _round_up(HID_PI, 128)     # 896
HID_V_PAD = _round_up(HID_V, 128)       # 640
HID_TOT = HID_PI_PAD + HID_V_PAD        # 1536


def _chip_generation():
    """Best-effort TPU generation sniff: 5 / 6 / 7, or 0 for unknown/older."""
    try:
        kind = jax.devices()[0].device_kind.lower().replace(" ", "")
    except Exception:
        return 0
    if "v7" in kind or "tpu7" in kind:
        return 7
    if "v6" in kind or "tpu6" in kind:
        return 6
    if "v5" in kind:
        return 5
    return 0


# ---------------------------------------------------------------------------
# Kernel: one fused layer-1 MXU pass, split layer-2 (MXU pi head + VPU/XLU
# value head), single lane-dense output slab.
# ---------------------------------------------------------------------------
def make_a3c_kernel(a_dim, out_pad):
    def kernel(x_ref, w1_ref, b1_ref, w2pi_ref, w2v_ref, b2_ref, out_ref):
        # ---- Layer 1 (pi & v fused): bf16 MXU operands, f32 accumulation.
        x = x_ref[...].astype(w1_ref.dtype)
        acc = jnp.dot(x, w1_ref[...], preferred_element_type=jnp.float32)
        # Bias add + relu6 epilogue in b1's dtype (bf16 on v6e/v7x, f32 on v5e).
        h = acc.astype(b1_ref.dtype) + b1_ref[...]
        h = jnp.clip(h, 0.0, 6.0)

        # ---- Layer 2, pi head: only the pi half of h feeds the MXU (K=896,
        # not 1536) -> no zero-block MACs.
        h_pi = h[:, :HID_PI_PAD].astype(w2pi_ref.dtype)
        out = jnp.dot(h_pi, w2pi_ref[...],
                      preferred_element_type=jnp.float32) + b2_ref[...]

        # ---- Layer 2, value head: VPU multiply + cross-lane reduce over the
        # v half, merged into lane `a_dim` of the lane-dense output slab.
        h_v = h[:, HID_PI_PAD:].astype(jnp.float32)
        v = jnp.sum(h_v * w2v_ref[...], axis=-1, keepdims=True)        # (bm, 1)
        lane = jax.lax.broadcasted_iota(jnp.int32, (1, out_pad), 1)
        vmask = (lane == a_dim).astype(jnp.float32)                    # (1, out_pad)
        out = out + v * vmask

        out_ref[...] = out.astype(out_ref.dtype)

    return kernel


# ---------------------------------------------------------------------------
# Parameter construction / packing (done once at init, not per forward call).
# ---------------------------------------------------------------------------
def init_params(key, s_dim, a_dim):
    """Matches nn.init.normal_(std=0.1) weights, zero biases.
    Weights stored as (in, out) = PyTorch weight.T (same distribution)."""
    ks = jax.random.split(key, 4)
    return {
        "w_pi1": 0.1 * jax.random.normal(ks[0], (s_dim, HID_PI), jnp.float32),
        "b_pi1": jnp.zeros((HID_PI,), jnp.float32),
        "w_pi2": 0.1 * jax.random.normal(ks[1], (HID_PI, a_dim), jnp.float32),
        "b_pi2": jnp.zeros((a_dim,), jnp.float32),
        "w_v1": 0.1 * jax.random.normal(ks[2], (s_dim, HID_V), jnp.float32),
        "b_v1": jnp.zeros((HID_V,), jnp.float32),
        "w_v2": 0.1 * jax.random.normal(ks[3], (HID_V, 1), jnp.float32),
        "b_v2": jnp.zeros((1,), jnp.float32),
    }


def pack_params(raw, a_dim, *, weight_dtype=jnp.bfloat16,
                epilogue_dtype=jnp.float32):
    """Fuse + zero-pad the four Linear layers into lane-aligned operands."""
    s_dim = raw["w_pi1"].shape[0]
    out_pad = _round_up(a_dim + 1, 128)

    w1 = jnp.zeros((s_dim, HID_TOT), jnp.float32)
    w1 = w1.at[:, :HID_PI].set(raw["w_pi1"])
    w1 = w1.at[:, HID_PI_PAD:HID_PI_PAD + HID_V].set(raw["w_v1"])

    b1 = jnp.zeros((1, HID_TOT), jnp.float32)
    b1 = b1.at[0, :HID_PI].set(raw["b_pi1"])
    b1 = b1.at[0, HID_PI_PAD:HID_PI_PAD + HID_V].set(raw["b_v1"])

    # pi head of layer 2 only (value head handled on the VPU/XLU).
    w2_pi = jnp.zeros((HID_PI_PAD, out_pad), jnp.float32)
    w2_pi = w2_pi.at[:HID_PI, :a_dim].set(raw["w_pi2"])

    # value head weights as a lane-aligned row (f32: full-precision VPU math).
    w2_v = jnp.zeros((1, HID_V_PAD), jnp.float32)
    w2_v = w2_v.at[0, :HID_V].set(raw["w_v2"][:, 0])

    b2 = jnp.zeros((1, out_pad), jnp.float32)
    b2 = b2.at[0, :a_dim].set(raw["b_pi2"])
    b2 = b2.at[0, a_dim].set(raw["b_v2"][0])

    return {
        "w1": w1.astype(weight_dtype),
        "b1": b1.astype(epilogue_dtype),     # bf16 epilogue on v6e/v7x, f32 on v5e
        "w2_pi": w2_pi.astype(weight_dtype),
        "w2_v": w2_v,                        # f32
        "b2": b2,                            # f32
    }


# ---------------------------------------------------------------------------
# Batch-tile selection (per the performance review).
# ---------------------------------------------------------------------------
def _select_batch_tile(B, gen):
    pad8 = _round_up(max(B, 1), 8)
    if pad8 <= 256:
        return pad8, pad8                    # tiny batch: single grid step
    # Big tiles amortize the ~0.35us/step pipeline overhead.  v5e: cap 1024 so
    # the (bm,1536) f32 intermediate fits the 16 MiB default scoped-VMEM;
    # v6e/v7x: 2048 fits their 32 MiB default scoped-VMEM.
    cap = 2048 if gen in (6, 7) else 1024
    min_steps = 2 if gen == 7 else 1         # v7x: give both TensorCores work
    steps = max(min_steps, -(-pad8 // cap))
    bm = _round_up(-(-B // steps), 256)
    pad_b = steps * bm
    return bm, pad_b


# ---------------------------------------------------------------------------
# Wrapper.
# ---------------------------------------------------------------------------
def a3c_forward(x, packed, a_dim, *, gen=None):
    if gen is None:
        gen = _chip_generation()
    B, s_dim = x.shape
    out_pad = packed["b2"].shape[1]

    bm, pad_b = _select_batch_tile(B, gen)
    if pad_b != B:
        x = jnp.pad(x, ((0, pad_b - B), (0, 0)))

    grid = (pad_b // bm,)
    kernel = make_a3c_kernel(a_dim, out_pad)

    out = pl.pallas_call(
        kernel,
        out_shape=jax.ShapeDtypeStruct((pad_b, out_pad), jnp.float32),
        grid_spec=pltpu.PrefetchScalarGridSpec(
            num_scalar_prefetch=0,
            grid=grid,
            in_specs=[
                pl.BlockSpec((bm, s_dim), lambda i: (i, 0)),            # x tile
                pl.BlockSpec((s_dim, HID_TOT), lambda i: (0, 0)),       # fused W1
                pl.BlockSpec((1, HID_TOT), lambda i: (0, 0)),           # fused b1
                pl.BlockSpec((HID_PI_PAD, out_pad), lambda i: (0, 0)),  # pi-head W2
                pl.BlockSpec((1, HID_V_PAD), lambda i: (0, 0)),         # value-head row
                pl.BlockSpec((1, out_pad), lambda i: (0, 0)),           # fused b2
            ],
            out_specs=pl.BlockSpec((bm, out_pad), lambda i: (i, 0)),
        ),
        compiler_params=pltpu.CompilerParams(
            dimension_semantics=("parallel",)),
    )(x, packed["w1"], packed["b1"], packed["w2_pi"], packed["w2_v"],
      packed["b2"])

    logits = out[:B, :a_dim]
    values = out[:B, a_dim:a_dim + 1]
    return logits, values


# ---------------------------------------------------------------------------
# References for correctness checks.
# ---------------------------------------------------------------------------
def reference_forward_f32(x, raw):
    """Original PyTorch module semantics in full f32."""
    h_pi = jnp.clip(x @ raw["w_pi1"] + raw["b_pi1"], 0.0, 6.0)
    logits = h_pi @ raw["w_pi2"] + raw["b_pi2"]
    h_v = jnp.clip(x @ raw["w_v1"] + raw["b_v1"], 0.0, 6.0)
    values = h_v @ raw["w_v2"] + raw["b_v2"]
    return logits, values


def reference_forward_packed(x, packed, a_dim):
    """Same math as the kernel (bf16 operands, f32 accum) in plain JAX."""
    xb = x.astype(packed["w1"].dtype)
    acc = jnp.dot(xb, packed["w1"], preferred_element_type=jnp.float32)
    h = jnp.clip(acc.astype(packed["b1"].dtype) + packed["b1"], 0.0, 6.0)
    out = jnp.dot(h[:, :HID_PI_PAD].astype(packed["w2_pi"].dtype),
                  packed["w2_pi"],
                  preferred_element_type=jnp.float32) + packed["b2"]
    v = jnp.sum(h[:, HID_PI_PAD:].astype(jnp.float32) * packed["w2_v"],
                axis=-1, keepdims=True)
    logits = out[:, :a_dim]
    values = out[:, a_dim:a_dim + 1] + v
    return logits, values


if __name__ == "__main__":
    s_dim, a_dim = 32, 8

    gen = _chip_generation()
    epilogue_dtype = jnp.bfloat16 if gen in (6, 7) else jnp.float32

    key = jax.random.PRNGKey(0)
    k_params, k_x_small, k_x_big = jax.random.split(key, 3)
    raw = init_params(k_params, s_dim, a_dim)
    packed = pack_params(raw, a_dim, epilogue_dtype=epilogue_dtype)

    # Exercise both the small single-step path and the tiled/padded batch path.
    for batch, kx in ((4, k_x_small), (384, k_x_big)):
        x = jax.random.normal(kx, (batch, s_dim), jnp.float32)

        logits, values = a3c_forward(x, packed, a_dim, gen=gen)
        jax.block_until_ready((logits, values))

        assert logits.shape == (batch, a_dim)
        assert values.shape == (batch, 1)

        # Kernel exactness vs. a matched-precision reference (same math).
        ref_l_m, ref_v_m = reference_forward_packed(x, packed, a_dim)
        assert jnp.allclose(logits, ref_l_m, atol=2e-3, rtol=2e-3)
        assert jnp.allclose(values, ref_v_m, atol=2e-3, rtol=2e-3)

        # Fidelity vs. the original full-f32 module semantics (bf16 rounding only).
        ref_l, ref_v = reference_forward_f32(x, raw)
        assert jnp.allclose(logits, ref_l, atol=1e-1, rtol=5e-2)
        assert jnp.allclose(values, ref_v, atol=1e-1, rtol=5e-2)

    # TODO(synk): choose_action / loss_func (Categorical sampling, A3C loss) are
    # host-side training logic, not part of the forward-pass kernel.

    print("KERNEL_OK")
</pallas_src>

<mosaic_0001>
module attributes {stable_mosaic.version = 11 : i64} {
  func.func @kernel(%arg0: i32, %arg1: memref<8x32xf32, #tpu.memory_space<vmem>>, %arg2: memref<32x1536xbf16, #tpu.memory_space<vmem>>, %arg3: memref<1x1536xf32, #tpu.memory_space<vmem>>, %arg4: memref<896x128xbf16, #tpu.memory_space<vmem>>, %arg5: memref<1x640xf32, #tpu.memory_space<vmem>>, %arg6: memref<1x128xf32, #tpu.memory_space<vmem>>, %arg7: memref<8x128xf32, #tpu.memory_space<vmem>>) attributes {dimension_semantics = [#tpu.dimension_semantics<parallel>], iteration_bounds = array<i64: 1>, scalar_prefetch = 0 : i64, scratch_operands = 0 : i64, tpu.core_type = #tpu.core_type<tc>, window_params = [{transform_indices = @transform_0, window_bounds = array<i64: 8, 32>}, {pipeline_mode = #tpu.pipeline_mode<synchronous>, transform_indices = @transform_1, window_bounds = array<i64: 32, 1536>}, {pipeline_mode = #tpu.pipeline_mode<synchronous>, transform_indices = @transform_2, window_bounds = array<i64: 1, 1536>}, {pipeline_mode = #tpu.pipeline_mode<synchronous>, transform_indices = @transform_3, window_bounds = array<i64: 896, 128>}, {pipeline_mode = #tpu.pipeline_mode<synchronous>, transform_indices = @transform_4, window_bounds = array<i64: 1, 640>}, {pipeline_mode = #tpu.pipeline_mode<synchronous>, transform_indices = @transform_5, window_bounds = array<i64: 1, 128>}, {transform_indices = @transform_6, window_bounds = array<i64: 8, 128>}]} {
    %c0 = arith.constant 0 : index
    %c0_0 = arith.constant 0 : index
    %0 = vector.load %arg1[%c0, %c0_0] : memref<8x32xf32, #tpu.memory_space<vmem>>, vector<8x32xf32>
    %1 = arith.truncf %0 : vector<8x32xf32> to vector<8x32xbf16>
    %c0_1 = arith.constant 0 : index
    %c0_2 = arith.constant 0 : index
    %2 = vector.load %arg2[%c0_1, %c0_2] : memref<32x1536xbf16, #tpu.memory_space<vmem>>, vector<32x1536xbf16>
    %cst = arith.constant dense<0.000000e+00> : vector<8x1536xf32>
    %3 = tpu.matmul %1, %2, %cst {dimension_numbers = #tpu.dot_dimension_numbers<[1], [0], [0], [1], [0, 0, 1, 1], [], []>} : vector<8x32xbf16>, vector<32x1536xbf16>, vector<8x1536xf32> -> vector<8x1536xf32>
    %c0_3 = arith.constant 0 : index
    %c0_4 = arith.constant 0 : index
    %4 = vector.load %arg3[%c0_3, %c0_4] : memref<1x1536xf32, #tpu.memory_space<vmem>>, vector<1x1536xf32>
    %5 = vector.broadcast %4 : vector<1x1536xf32> to vector<8x1536xf32>
    %6 = arith.addf %3, %5 : vector<8x1536xf32>
    %cst_5 = arith.constant 0.000000e+00 : f32
    %cst_6 = arith.constant 6.000000e+00 : f32
    %7 = vector.broadcast %cst_5 : f32 to vector<8x1536xf32>
    %8 = arith.maximumf %7, %6 : vector<8x1536xf32>
    %9 = vector.broadcast %cst_6 : f32 to vector<8x1536xf32>
    %10 = arith.minimumf %9, %8 : vector<8x1536xf32>
    %11 = vector.extract_strided_slice %10 {offsets = [0, 0], sizes = [8, 896], strides = [1, 1]} : vector<8x1536xf32> to vector<8x896xf32>
    %12 = arith.truncf %11 : vector<8x896xf32> to vector<8x896xbf16>
    %c0_7 = arith.constant 0 : index
    %c0_8 = arith.constant 0 : index
    %13 = vector.load %arg4[%c0_7, %c0_8] : memref<896x128xbf16, #tpu.memory_space<vmem>>, vector<896x128xbf16>
    %cst_9 = arith.constant dense<0.000000e+00> : vector<8x128xf32>
    %14 = tpu.matmul %12, %13, %cst_9 {dimension_numbers = #tpu.dot_dimension_numbers<[1], [0], [0], [1], [0, 0, 1, 1], [], []>} : vector<8x896xbf16>, vector<896x128xbf16>, vector<8x128xf32> -> vector<8x128xf32>
    %c0_10 = arith.constant 0 : index
    %c0_11 = arith.constant 0 : index
    %15 = vector.load %arg6[%c0_10, %c0_11] : memref<1x128xf32, #tpu.memory_space<vmem>>, vector<1x128xf32>
    %16 = vector.broadcast %15 : vector<1x128xf32> to vector<8x128xf32>
    %17 = arith.addf %14, %16 : vector<8x128xf32>
    %18 = vector.extract_strided_slice %10 {offsets = [0, 896], sizes = [8, 640], strides = [1, 1]} : vector<8x1536xf32> to vector<8x640xf32>
    %c0_12 = arith.constant 0 : index
    %c0_13 = arith.constant 0 : index
    %19 = vector.load %arg5[%c0_12, %c0_13] : memref<1x640xf32, #tpu.memory_space<vmem>>, vector<1x640xf32>
    %20 = vector.broadcast %19 : vector<1x640xf32> to vector<8x640xf32>
    %21 = arith.mulf %18, %20 : vector<8x640xf32>
    %cst_14 = arith.constant dense<0.000000e+00> : vector<8xf32>
    %22 = vector.multi_reduction <add>, %21, %cst_14 [1] : vector<8x640xf32> to vector<8xf32>
    %23 = vector.shape_cast %22 : vector<8xf32> to vector<8x1xf32>
    %24 = tpu.iota {dimensions = array<i32: 1>} : vector<1x128xi32>
    %c8_i32 = arith.constant 8 : i32
    %25 = vector.broadcast %c8_i32 : i32 to vector<1x128xi32>
    %26 = arith.cmpi eq, %24, %25 : vector<1x128xi32>
    %27 = arith.extui %26 : vector<1x128xi1> to vector<1x128xi32>
    %28 = arith.sitofp %27 : vector<1x128xi32> to vector<1x128xf32>
    %29 = vector.broadcast %23 : vector<8x1xf32> to vector<8x128xf32>
    %30 = vector.broadcast %28 : vector<1x128xf32> to vector<8x128xf32>
    %31 = arith.mulf %29, %30 : vector<8x128xf32>
    %32 = arith.addf %17, %31 : vector<8x128xf32>
    %c0_15 = arith.constant 0 : index
    %c0_16 = arith.constant 0 : index
    %33 = vector.load %arg7[%c0_15, %c0_16] : memref<8x128xf32, #tpu.memory_space<vmem>>, vector<8x128xf32>
    tpu.vector_store %arg7[%c0_15, %c0_16], %32 {strides = array<i32>} : memref<8x128xf32, #tpu.memory_space<vmem>>, vector<8x128xf32>,
    return
  }
  func.func @transform_0(%arg0: i32) -> (i32, i32) {
    %c0_i32 = arith.constant 0 : i32
    %c0_i32_0 = arith.constant 0 : i32
    return %arg0, %c0_i32 : i32, i32
  }
  func.func @transform_1(%arg0: i32) -> (i32, i32) {
    %c0_i32 = arith.constant 0 : i32
    %c0_i32_0 = arith.constant 0 : i32
    %c0_i32_1 = arith.constant 0 : i32
    return %c0_i32, %c0_i32_0 : i32, i32
  }
  func.func @transform_2(%arg0: i32) -> (i32, i32) {
    %c0_i32 = arith.constant 0 : i32
    %c0_i32_0 = arith.constant 0 : i32
    %c0_i32_1 = arith.constant 0 : i32
    return %c0_i32, %c0_i32_0 : i32, i32
  }
  func.func @transform_3(%arg0: i32) -> (i32, i32) {
    %c0_i32 = arith.constant 0 : i32
    %c0_i32_0 = arith.constant 0 : i32
    %c0_i32_1 = arith.constant 0 : i32
    return %c0_i32, %c0_i32_0 : i32, i32
  }
  func.func @transform_4(%arg0: i32) -> (i32, i32) {
    %c0_i32 = arith.constant 0 : i32
    %c0_i32_0 = arith.constant 0 : i32
    %c0_i32_1 = arith.constant 0 : i32
    return %c0_i32, %c0_i32_0 : i32, i32
  }
  func.func @transform_5(%arg0: i32) -> (i32, i32) {
    %c0_i32 = arith.constant 0 : i32
    %c0_i32_0 = arith.constant 0 : i32
    %c0_i32_1 = arith.constant 0 : i32
    return %c0_i32, %c0_i32_0 : i32, i32
  }
  func.func @transform_6(%arg0: i32) -> (i32, i32) {
    %c0_i32 = arith.constant 0 : i32
    %c0_i32_0 = arith.constant 0 : i32
    return %arg0, %c0_i32 : i32, i32
  }
}

</mosaic_0001>

<bundles_post_ra>
// kernel: tpu_custom_call.1
= control target key start
LH: loop header
LB: loop body
LE: loop exit
PB: predicated region body
PF: predicated region fallthrough
CT: control target
= control target key end

     0   :  { %11 = vsyncpa [#allocation3], 0  ;;  %s1785_s0 = inlined_call_operand.hbm [shape: f32[8,32], index: 0, kind: input, shape index: {}]   ;;  %s1786_s1 = inlined_call_operand.hbm [shape: bf16[32,1536], index: 1, kind: input, shape index: {}]   ;;  %s1787_s2 = inlined_call_operand.hbm [shape: f32[1,1536], index: 2, kind: input, shape index: {}]   ;;  %s1788_s3 = inlined_call_operand.hbm [shape: bf16[896,128], index: 3, kind: input, shape index: {}]   ;;  %s1789_s4 = inlined_call_operand.vmem [shape: f32[1,640], index: 4, kind: input, shape index: {}]   ;;  %s1790_s5 = inlined_call_operand.vmem [shape: f32[1,128], index: 5, kind: input, shape index: {}]   ;;  %s1791_s6 = inlined_call_operand.hbm [shape: f32[8,128], index: 6, kind: output, shape index: {}]  }
   0x1   :  { %12 = vsyncpa [#allocation6], 0 }
   0x2   :  { %13 = vsyncpa [#allocation9], 0 }
   0x3   :  { %14 = vsyncpa [#allocation4], 0  ;;  %s1640_s21 = smov [#allocation5]  }
   0x4   :  { %s30_s22 = sshll.u32 %s1640_s21, 4  ;;  %s31_s22 = int_to_ptr.vmem [resolvable:$true] %s30_s22 }
   0x5   :  { %s1540_s23 = scalar_lea.vmem %s31_s22, 3072  ;;  %p1545_p1 = scmp.lt.s32.totalorder %s31_s22, %s31_s22 }
   0x6   :  { %p1541_p0 = scmp.ne.s32.totalorder %s31_s22, %s1540_s23  ;;  %p1546_p2 = scmp.lt.s32.totalorder %s1540_s23, %s1540_s23 }
   0x8   :  { %p1547_p3 = por %p1546_p2, %p1545_p1 }
   0xa   :  { %p1548_p4 = pnand %p1547_p3, %p1541_p0 }
   0xc   :  { %1551 = shalt.err (!%p1548_p4)
}
   0xd   :  { %s1641_s24 = smov 768   ;;  %s1642_s25 = smov 48  }
   0xe   :  { %36 = dma.hbm_to_vmem [thread:$0]  %s1786_s1, 3072, %s31_s22, [#allocation6], %s1641_s24, %s1641_s24, %s1642_s25  }
   0xf   :  { %s1643_s28 = smov [#allocation2]   ;;  %s1644_s30 = smov [#allocation7]  }
  0x10   :  { %s21_s29 = sshll.u32 %s1643_s28, 4  ;;  %s43_s7 = sshll.u32 %s1644_s30, 4  ;;  %s22_s29 = int_to_ptr.vmem [resolvable:$true] %s21_s29  ;;  %s44_s7 = int_to_ptr.vmem [resolvable:$true] %s43_s7 }
  0x11   :  { %s1560_s8 = scalar_lea.vmem %s22_s29, 128  ;;  %p1565_p6 = scmp.lt.s32.totalorder %s22_s29, %s22_s29 }
  0x12   :  { %p1561_p5 = scmp.ne.s32.totalorder %s22_s29, %s1560_s8  ;;  %p1566_p7 = scmp.lt.s32.totalorder %s1560_s8, %s1560_s8 }
  0x14   :  { %p1567_p8 = por %p1566_p7, %p1565_p6 }
  0x16   :  { %p1568_p9 = pnand %p1567_p8, %p1561_p5 }
  0x18   :  { %1571 = shalt.err (!%p1568_p9)
}
  0x19   :  { %24 = dma.hbm_to_vmem [thread:$0]  %s1785_s0, 128, %s22_s29, [#allocation3]  }
  0x1a   :  { %s1580_s11 = scalar_lea.vmem %s44_s7, 192  ;;  %p1585_p11 = scmp.lt.s32.totalorder %s44_s7, %s44_s7 }
  0x1b   :  { %p1581_p10 = scmp.ne.s32.totalorder %s44_s7, %s1580_s11  ;;  %p1586_p12 = scmp.lt.s32.totalorder %s1580_s11, %s1580_s11 }
  0x1d   :  { %p1587_p13 = por %p1586_p12, %p1585_p11 }
  0x1f   :  { %p1588_p0 = pnand %p1587_p13, %p1581_p10 }
  0x21   :  { %1591 = shalt.err (!%p1588_p0)
}
  0x22   :  { %46 = dma.hbm_to_vmem [thread:$0]  %s1787_s2, 192, %s44_s7, [#allocation6]  }
  0x23   :  { %s1645_s13 = smov [#allocation8]  }
  0x24   :  { %s52_s14 = sshll.u32 %s1645_s13, 4  ;;  %s53_s14 = int_to_ptr.vmem [resolvable:$true] %s52_s14 }
  0x25   :  { %s1600_s15 = scalar_lea.vmem %s53_s14, 7168  ;;  %p1605_p2 = scmp.lt.s32.totalorder %s53_s14, %s53_s14 }
  0x26   :  { %p1601_p1 = scmp.ne.s32.totalorder %s53_s14, %s1600_s15  ;;  %p1606_p3 = scmp.lt.s32.totalorder %s1600_s15, %s1600_s15 }
  0x28   :  { %p1607_p4 = por %p1606_p3, %p1605_p2 }
  0x2a   :  { %p1608_p5 = pnand %p1607_p4, %p1601_p1 }
  0x2c   :  { %1611 = shalt.err (!%p1608_p5)
}
  0x2d   :  { %s1646_s0 = smov 64   ;;  %s1647_s16 = smov 4  }
  0x2e   :  { %58 = dma.hbm_to_vmem [thread:$0]  %s1788_s3, 7168, %s53_s14, [#allocation9], %s1646_s0, %s1646_s0, %s1647_s16  }
  0x2f   :  { %1632 = dma.done.wait [#allocation3], 128  }
  0x30   :  { %1633 = vsyncadd [#allocation3], 4294967168 }
  0x31   :  { %1634 = dma.done.wait [#allocation6], 3264  }
  0x32   :  { %1635 = vsyncadd [#allocation6], 4294964032 }
  0x33   :  { %1636 = dma.done.wait [#allocation9], 7168  }
  0x34   :  { %1637 = vsyncadd [#allocation9], 4294960128  ;;  %v1648_v0 = vmov 0   ;;  %v1440_v1 = vld [vmem:[#allocation5 + $0x64] ss:$48 sps:$4 sm:$0xff]   ;;  %v76_v9 = vld [vmem:[#allocation2] sm:$0xff]  ;;  %v106_v61 = vlaneseq }
  0x35   :  { %322 = vmatprep.mubr.bf16.mxu0 %v1648_v0  ;;  %363 = vmatprep.mubr.bf16.mxu1 %v1648_v0  ;;  %v1442_v2 = vld [vmem:[#allocation5 + $0x6c] ss:$48 sps:$4 sm:$0xff]   ;;  %v1444_v3 = vld [vmem:[#allocation5 + $0x60] ss:$48 sps:$4 sm:$0xff]   ;;  %v1445_v4 = vld [vmem:[#allocation5 + $0x68] ss:$48 sps:$4 sm:$0xff]   ;;  %v77_v11 = vpack.c.bf16 %v76_v9, %v76_v9 }
  0x36   :  { %302 = vmatprep.subr.bf16.mxu0 %v1440_v1  ;;  %343 = vmatprep.subr.bf16.mxu1 %v1442_v2  ;;  %v1446_v5 = vld [vmem:[#allocation5 + $0x4] ss:$48 sps:$4 sm:$0xff]   ;;  %v1448_v6 = vld [vmem:[#allocation5 + $0xc] ss:$48 sps:$4 sm:$0xff]   ;;  %v1450_v7 = vld [vmem:[#allocation5] ss:$48 sps:$4 sm:$0xff]  }
  0x37   :  { %303 = vmatpush1.bf16.msra.mxu0 %v1444_v3  ;;  %344 = vmatpush1.bf16.msra.mxu1 %v1445_v4  ;;  %v1451_v8 = vld [vmem:[#allocation5 + $0x8] ss:$48 sps:$4 sm:$0xff]   ;;  %v1454_v10 = vld [vmem:[#allocation5 + $0x74] ss:$48 sps:$4 sm:$0xff]   ;;  %vm286_vm0 = vcmask 261120   ;;  %v1480_v31 = vld [vmem:[#allocation8 + $0x70] sm:$0xff]  }
  0x38   :  { %304 = vmatprep.subr.bf16.mxu0 %v1446_v5  ;;  %345 = vmatprep.subr.bf16.mxu1 %v1448_v6  ;;  %v1452_v12 = vld [vmem:[#allocation5 + $0x70] ss:$48 sps:$4 sm:$0xff]   ;;  %v1457_v13 = vld [vmem:[#allocation5 + $0x14] ss:$48 sps:$4 sm:$0xff]   ;;  %v1460_v14 = vld [vmem:[#allocation5 + $0x7c] ss:$48 sps:$4 sm:$0xff]  }
  0x39   :  { %v1458_v15 = vld [vmem:[#allocation5 + $0x78] ss:$48 sps:$4 sm:$0xff]   ;;  %v1463_v16 = vld [vmem:[#allocation5 + $0x1c] ss:$48 sps:$4 sm:$0xff]   ;;  %v1455_v17 = vld [vmem:[#allocation5 + $0x10] ss:$48 sps:$4 sm:$0xff]  }
  0x3a   :  { %v1466_v18 = vld [vmem:[#allocation5 + $0x84] ss:$48 sps:$4 sm:$0xff]   ;;  %v1461_v19 = vld [vmem:[#allocation5 + $0x18] ss:$48 sps:$4 sm:$0xff]   ;;  %v1472_v20 = vld [vmem:[#allocation5 + $0x8c] ss:$48 sps:$4 sm:$0xff]  }
  0x3b   :  { %305 = vmatpush1.bf16.msra.mxu0 %v1450_v7  ;;  %346 = vmatpush1.bf16.msra.mxu1 %v1451_v8  ;;  %v1464_v21 = vld [vmem:[#allocation5 + $0x80] ss:$48 sps:$4 sm:$0xff]   ;;  %v1469_v22 = vld [vmem:[#allocation5 + $0x24] ss:$48 sps:$4 sm:$0xff]   ;;  %v1470_v24 = vld [vmem:[#allocation5 + $0x88] ss:$48 sps:$4 sm:$0xff]  }
  0x3c   :  { %384 = vmatprep.subr.bf16.mxu0 %v1454_v10  ;;  %425 = vmatprep.subr.bf16.mxu1 %v1460_v14  ;;  %v1467_v23 = vld [vmem:[#allocation5 + $0x20] ss:$48 sps:$4 sm:$0xff]   ;;  %v1475_v25 = vld [vmem:[#allocation5 + $0x2c] ss:$48 sps:$4 sm:$0xff]   ;;  %v1473_v26 = vld [vmem:[#allocation5 + $0x28] ss:$48 sps:$4 sm:$0xff]  }
  0x3d   :  { %v1476_v27 = vld [vmem:[#allocation8 + $0x78] sm:$0xff]   ;;  %v1481_v32 = vld [vmem:[#allocation8 + $0xf0] sm:$0xff]   ;;  %v1484_v35 = vld [vmem:[#allocation8 + $0x68] sm:$0xff]   ;;  %v1649_v60 = vmov 0.0   ;;  %v1707_v62 = vshrl.u32 %v106_v61, 7  ;;  %vm1650_vm1 = vmmov 0  }
  0x3e   :  { %1269 = vmatmul.mubr.msk.bf16.vlgmr.msra.gmra.mxu0 %vm286_vm0, %v77_v11  ;;  %1270 = vmatmul.mubr.msk.bf16.vlgmr.msra.gmra.mxu1 %vm286_vm0, %v77_v11  ;;  %v1477_v28 = vld [vmem:[#allocation8 + $0xf8] sm:$0xff]   ;;  %v1482_v33 = vld [vmem:[#allocation8 + $0x30] sm:$0xff]   ;;  %v1485_v36 = vld [vmem:[#allocation8 + $0xe8] sm:$0xff]  }
  0x3f   :  { %385 = vmatpush1.bf16.msra.mxu0 %v1452_v12  ;;  %404 = vmatprep.mubr.bf16.mxu0 %v1648_v0  ;;  %v1478_v29 = vld [vmem:[#allocation8 + $0x38] sm:$0xff]   ;;  %v1483_v34 = vld [vmem:[#allocation8 + $0xb0] sm:$0xff]   ;;  %v1486_v37 = vld [vmem:[#allocation8 + $0x28] sm:$0xff]   ;;  %v1710_v63 = vsub.s32 0, %v1707_v62  ;;  %v1718_v2 = vsub.s32 1, %v1707_v62  ;;  %v1721_v3 = vsub.s32 3, %v1707_v62 }
  0x40   :  { %386 = vmatprep.subr.bf16.mxu0 %v1457_v13  ;;  %426 = vmatpush1.bf16.msra.mxu1 %v1458_v15  ;;  %v1479_v30 = vld [vmem:[#allocation8 + $0xb8] sm:$0xff]   ;;  %v1487_v38 = vld [vmem:[#allocation8 + $0xa8] sm:$0xff]   ;;  %v1488_v39 = vld [vmem:[#allocation8 + $0x60] sm:$0xff]   ;;  %v128_v14 = vsub.s32 5, %v1707_v62 }
  0x41   :  { %445 = vmatprep.mubr.bf16.mxu1 %v1648_v0  ;;  %427 = vmatprep.subr.bf16.mxu1 %v1463_v16  ;;  %v1489_v40 = vld [vmem:[#allocation8 + $0xe0] sm:$0xff]   ;;  %v1492_v43 = vld [vmem:[#allocation8 + $0x58] sm:$0xff]   ;;  %v1496_v46 = vld [vmem:[#allocation8 + $0x50] sm:$0xff]  }
  0x42   :  { %v1490_v41 = vld [vmem:[#allocation8 + $0x20] sm:$0xff]   ;;  %v1493_v44 = vld [vmem:[#allocation8 + $0xd8] sm:$0xff]   ;;  %v1497_v48 = vld [vmem:[#allocation8 + $0xd0] sm:$0xff]  }
  0x43   :  { %387 = vmatpush1.bf16.msra.mxu0 %v1455_v17  ;;  %v1491_v42 = vld [vmem:[#allocation8 + $0xa0] sm:$0xff]   ;;  %v1494_v45 = vld [vmem:[#allocation8 + $0x18] sm:$0xff]   ;;  %v1498_v49 = vld [vmem:[#allocation8 + $0x10] sm:$0xff]  }
  0x44   :  { %466 = vmatprep.subr.bf16.mxu0 %v1466_v18  ;;  %428 = vmatpush1.bf16.msra.mxu1 %v1461_v19  ;;  %v1495_v47 = vld [vmem:[#allocation8 + $0x98] sm:$0xff]   ;;  %v1499_v50 = vld [vmem:[#allocation8 + $0x90] sm:$0xff]   ;;  %v1500_v51 = vld [vmem:[#allocation8 + $0x48] sm:$0xff]  }
  0x45   :  { %507 = vmatprep.subr.bf16.mxu1 %v1472_v20  ;;  %v1501_v52 = vld [vmem:[#allocation8 + $0xc8] sm:$0xff]   ;;  %v1504_v55 = vld [vmem:[#allocation8 + $0x40] sm:$0xff]   ;;  %v1508_v59 = vld [vmem:[#allocation8 + $0x178] sm:$0xff]  }
  0x46   :  { %1271 = vmatmul.mubr.msk.bf16.vlgmr.msra.gmra.mxu0 %vm286_vm0, %v77_v11  ;;  %v1502_v53 = vld [vmem:[#allocation8 + $0x8] sm:$0xff]   ;;  %v1505_v56 = vld [vmem:[#allocation8 + $0xc0] sm:$0xff]   ;;  %v1715_v1 = vld [vmem:[#allocation7] sm:$0xff] }
  0x47   :  { %467 = vmatpush1.bf16.msra.mxu0 %v1464_v21  ;;  %486 = vmatprep.mubr.bf16.mxu0 %v1648_v0  ;;  %v1503_v54 = vld [vmem:[#allocation8 + $0x88] sm:$0xff]   ;;  %v1506_v57 = vld [vmem:[#allocation8] sm:$0xff]   ;;  %v109_v4 = vrot.slane %v1715_v1, %v1710_v63  ;;  %v113_v6 = vrot.slane %v1715_v1, %v1718_v2  ;;  %v121_v7 = vrot.slane %v1715_v1, %v1721_v3 }
  0x48   :  { %1272 = vmatmul.mubr.msk.bf16.vlgmr.msra.gmra.mxu1 %vm286_vm0, %v77_v11  ;;  %468 = vmatprep.subr.bf16.mxu0 %v1469_v22  ;;  %v1507_v58 = vld [vmem:[#allocation8 + $0x80] sm:$0xff]  }
  0x49   :  { %508 = vmatpush1.bf16.msra.mxu1 %v1470_v24  ;;  %527 = vmatprep.mubr.bf16.mxu1 %v1648_v0  ;;  %v1713_v0 = vsub.s32 2, %v1707_v62  ;;  %v136_v24 = vsub.s32 7, %v1707_v62 }
  0x4a   :  { %509 = vmatprep.subr.bf16.mxu1 %v1475_v25 }
  0x4b   :  { %469 = vmatpush1.bf16.msra.mxu0 %v1467_v23  ;;  %v117_v5 = vrot.slane %v1715_v1, %v1713_v0 }
  0x4c   :  { %1333 = vmatprep.subr.bf16.mxu0 %v1476_v27 }
  0x4d   :  { %510 = vmatpush1.bf16.msra.mxu1 %v1473_v26 }
  0x4e   :  { %1273 = vmatmul.mubr.msk.bf16.vlgmr.msra.gmra.mxu0 %vm286_vm0, %v77_v11  ;;  %1355 = vmatprep.subr.bf16.mxu1 %v1477_v28 }
  0x4f   :  { %1334 = vmatpush3.bf16.msra.mxu0 %v1478_v29 }
  0x50   :  { %1274 = vmatmul.mubr.msk.bf16.vlgmr.msra.gmra.mxu1 %vm286_vm0, %v77_v11  ;;  %1335 = vmatprep.subr.bf16.mxu0 %v1480_v31 }
  0x51   :  { %1356 = vmatpush3.bf16.msra.mxu1 %v1479_v30  ;;  %v129_v30 = vrot.slane %v1715_v1, %v128_v14 }
  0x52   :  { %1357 = vmatprep.subr.bf16.mxu1 %v1481_v32 }
  0x53   :  { %1336 = vmatpush3.bf16.msra.mxu0 %v1482_v33 }
  0x54   :  { %1337 = vmatprep.subr.bf16.mxu0 %v1484_v35  ;;  %v1509_v35 = vld [vmem:[#allocation8 + $0x138] sm:$0xff]  }
  0x55   :  { %1358 = vmatpush3.bf16.msra.mxu1 %v1483_v34 }
  0x56   :  { %1359 = vmatprep.subr.bf16.mxu1 %v1485_v36  ;;  %v1510_v36 = vld [vmem:[#allocation8 + $0x1b8] sm:$0xff]  }
  0x57   :  { %1338 = vmatpush3.bf16.msra.mxu0 %v1486_v37  ;;  %v137_v37 = vrot.slane %v1715_v1, %v136_v24 }
  0x58   :  { %1339 = vmatprep.subr.bf16.mxu0 %v1488_v39  ;;  %v1511_v39 = vld [vmem:[#allocation8 + $0x170] sm:$0xff]  }
  0x59   :  { %1360 = vmatpush3.bf16.msra.mxu1 %v1487_v38 }
  0x5a   :  { %1361 = vmatprep.subr.bf16.mxu1 %v1489_v40 }
  0x5b   :  { %1340 = vmatpush3.bf16.msra.mxu0 %v1490_v41 }
  0x5c   :  { %1341 = vmatprep.subr.bf16.mxu0 %v1492_v43 }
  0x5d   :  { %1362 = vmatpush3.bf16.msra.mxu1 %v1491_v42  ;;  %v1739_v42 = vld [vmem:[#allocation7 + $0x8] sm:$0xf] }
  0x5e   :  { %1363 = vmatprep.subr.bf16.mxu1 %v1493_v44 }
  0x5f   :  { %1342 = vmatpush3.bf16.msra.mxu0 %v1494_v45 }
  0x60   :  { %1343 = vmatprep.subr.bf16.mxu0 %v1496_v46  ;;  %v1512_v46 = vld [vmem:[#allocation8 + $0x130] sm:$0xff]  }
  0x61   :  { %1364 = vmatpush3.bf16.msra.mxu1 %v1495_v47  ;;  %v1513_v47 = vld [vmem:[#allocation8 + $0x1b0] sm:$0xff]  }
  0x62   :  { %1365 = vmatprep.subr.bf16.mxu1 %v1497_v48 }
  0x63   :  { %1344 = vmatpush3.bf16.msra.mxu0 %v1498_v49 }
  0x64   :  { %1345 = vmatprep.subr.bf16.mxu0 %v1500_v51  ;;  %v141_v51 = vrot.slane %v1739_v42, %v1710_v63 }
  0x65   :  { %1366 = vmatpush3.bf16.msra.mxu1 %v1499_v50  ;;  %v1744_v50 = vld [vmem:[%s1789_s4] sm:$0x1f] }
  0x66   :  { %1367 = vmatprep.subr.bf16.mxu1 %v1501_v52  ;;  %v1514_v52 = vld [vmem:[#allocation8 + $0x168] sm:$0xff]  }
  0x67   :  { %1346 = vmatpush3.bf16.msra.mxu0 %v1502_v53 }
  0x68   :  { %1347 = vmatprep.subr.bf16.mxu0 %v1504_v55 }
  0x69   :  { %1368 = vmatpush3.bf16.msra.mxu1 %v1503_v54 }
  0x6a   :  { %1369 = vmatprep.subr.bf16.mxu1 %v1505_v56 }
  0x6b   :  { %1348 = vmatpush3.bf16.msra.mxu0 %v1506_v57  ;;  %v145_v57 = vrot.slane %v1739_v42, %v1718_v2 }
  0x6c   :  { %1377 = vmatprep.subr.bf16.mxu0 %v1508_v59  ;;  %v1187_v59 = vrot.slane %v1744_v50, %v1710_v63 }
  0x6d   :  { %1370 = vmatpush3.bf16.msra.mxu1 %v1507_v58  ;;  %v149_v58 = vrot.slane %v1739_v42, %v1713_v0 }
  0x6e   :  { %1408 = vmatprep.subr.bf16.mxu1 %v1649_v60 }
  0xfe   :  { %v324_v8 = vpop.f32.mrf.mxu0  ;;  %v365_v9 = vpop.f32.mrf.mxu1 }
  0xff   :  { %v325_v10 = vadd.f32 %v324_v8, %v109_v4  ;;  %v366_v11 = vadd.f32 %v365_v9, %v117_v5 }
 0x100   :  { %v326_v12 = vpop.f32.mrf.mxu0  ;;  %v367_v13 = vpop.f32.mrf.mxu1 }
 0x101   :  { %v536_v15 = vmax.f32 %v325_v10, 0.0  ;;  %v538_v16 = vmax.f32 %v366_v11, 0.0  ;;  %v327_v17 = vadd.f32 %v326_v12, %v113_v6  ;;  %v368_v18 = vadd.f32 %v367_v13, %v121_v7  ;;  %v1515_v6 = vld [vmem:[#allocation8 + $0x128] sm:$0xff]   ;;  %v1517_v12 = vld [vmem:[#allocation8 + $0x160] sm:$0xff]  }
 0x102   :  { %v328_v19 = vpop.f32.mrf.mxu0  ;;  %v369_v20 = vpop.f32.mrf.mxu1  ;;  %v1516_v7 = vld [vmem:[#allocation8 + $0x1a8] sm:$0xff]   ;;  %v153_v11 = vrot.slane %v1739_v42, %v1721_v3  ;;  %v124_v13 = vsub.s32 4, %v1707_v62 }
 0x103   :  { %v550_v21 = vmin.f32 %v538_v16, 6.0  ;;  %v537_v22 = vmax.f32 %v327_v17, 0.0  ;;  %v539_v23 = vmax.f32 %v368_v18, 0.0  ;;  %v548_v25 = vmin.f32 %v536_v15, 6.0 }
 0x104   :  { %v329_v26 = vpop.f32.mrf.mxu0  ;;  %v370_v27 = vpop.f32.mrf.mxu1  ;;  %v1191_v16 = vrot.slane %v1744_v50, %v1718_v2  ;;  %v132_v19 = vsub.s32 6, %v1707_v62  ;;  %v1520_v62 = vld [vmem:[#allocation8 + $0x158] sm:$0xff]  }
 0x105   :  { %v549_v28 = vmin.f32 %v537_v22, 6.0  ;;  %v551_v29 = vmin.f32 %v539_v23, 6.0  ;;  %v562_v31 = vpack.c.bf16 %v550_v21, %v550_v21  ;;  %v560_v38 = vpack.c.bf16 %v548_v25, %v548_v25  ;;  %v1518_v25 = vld [vmem:[#allocation8 + $0x120] sm:$0xff]  }
 0x106   :  { %v1734_v32 = vpop.f32.mrf.mxu0  ;;  %v1195_v21 = vrot.slane %v1744_v50, %v1713_v0  ;;  %v1199_v22 = vrot.slane %v1744_v50, %v1721_v3  ;;  %v1519_v26 = vld [vmem:[#allocation8 + $0x1a0] sm:$0xff]  }
 0x107   :  { %v561_v33 = vpack.c.bf16 %v549_v28, %v549_v28  ;;  %v563_v34 = vpack.c.bf16 %v551_v29, %v551_v29 }
 0x108   :  { %v408_v40 = vpop.f32.mrf.mxu0  ;;  %v1737_v41 = vpop.f32.mrf.mxu1 }
 0x109   :  { %1054 = vmatprep.mubr.bf16.mxu0 %v561_v33  ;;  %1094 = vmatprep.mubr.bf16.mxu1 %v563_v34  ;;  %v409_v43 = vadd.f32 %v408_v40, %v129_v30  ;;  %v1203_v30 = vrot.slane %v1744_v50, %v124_v13  ;;  %v1524_v50 = vld [vmem:[#allocation8 + $0x110] sm:$0xff]  }
 0x10a   :  { %1055 = vmatmul.mubr.bf16.vlgmr.msra.gmra.mxu0 %v560_v38  ;;  %1095 = vmatmul.mubr.bf16.vlgmr.msra.gmra.mxu1 %v562_v31  ;;  %v410_v44 = vpop.f32.mrf.mxu0  ;;  %v449_v45 = vpop.f32.mrf.mxu1  ;;  %v1521_v38 = vld [vmem:[#allocation8 + $0x118] sm:$0xff]  }
 0x10b   :  { %1378 = vmatpush3.bf16.msra.mxu0 %v1509_v35  ;;  %1409 = vmatpush3.bf16.msra.mxu1 %v1510_v36  ;;  %v541_v48 = vmax.f32 %v409_v43, 0.0  ;;  %v450_v49 = vadd.f32 %v449_v45, %v137_v37  ;;  %v133_v36 = vrot.slane %v1715_v1, %v132_v19  ;;  %v125_v45 = vrot.slane %v1715_v1, %v124_v13 }
 0x10c   :  { %1379 = vmatprep.subr.bf16.mxu0 %v1511_v39  ;;  %1410 = vmatprep.subr.bf16.mxu1 %v1649_v60  ;;  %v411_v53 = vpop.f32.mrf.mxu0  ;;  %v451_v54 = vpop.f32.mrf.mxu1  ;;  %v1522_v39 = vld [vmem:[#allocation8 + $0x198] sm:$0xff]  }
 0x10d   :  { %v553_v55 = vmin.f32 %v541_v48, 6.0  ;;  %v543_v56 = vmax.f32 %v450_v49, 0.0  ;;  %1424 = vmatprep.mubr.msk.bf16.mxu1 %vm1650_vm1, %v1649_v60  ;;  %v448_v49 = vadd.f32 %v1737_v41, %v133_v36  ;;  %v407_v53 = vadd.f32 %v1734_v32, %v125_v45  ;;  %v1526_v54 = vld [vmem:[#allocation8 + $0x148] sm:$0xff]   ;;  %v1529_v41 = vld [vmem:[#allocation8 + $0x140] sm:$0xff]  }
 0x10e   :  { %v452_v4 = vpop.f32.mrf.mxu1  ;;  %v488_v5 = vpop.f32.mrf.mxu0  ;;  %v1530_v32 = vld [vmem:[#allocation8 + $0x100] sm:$0xff]  }
 0x10f   :  { %1380 = vmatpush3.bf16.msra.mxu0 %v1512_v46  ;;  %1411 = vmatpush3.bf16.msra.mxu1 %v1513_v47  ;;  %v565_v8 = vpack.c.bf16 %v553_v55, %v553_v55  ;;  %v555_v9 = vmin.f32 %v543_v56, 6.0  ;;  %v489_v10 = vadd.f32 %v488_v5, %v141_v51  ;;  %v1523_v46 = vld [vmem:[#allocation8 + $0x150] sm:$0xff]   ;;  %v542_v55 = vmax.f32 %v448_v49, 0.0  ;;  %v1527_v56 = vld [vmem:[#allocation8 + $0x108] sm:$0xff]   ;;  %v1531_v4 = vld [vmem:[#allocation8 + $0x180] sm:$0xff]  }
 0x110   :  { %1381 = vmatprep.subr.bf16.mxu0 %v1514_v52  ;;  %1412 = vmatprep.subr.bf16.mxu1 %v1649_v60  ;;  %v490_v14 = vpop.f32.mrf.mxu0  ;;  %v529_v63 = vpop.f32.mrf.mxu1  ;;  %v1525_v51 = vld [vmem:[#allocation8 + $0x190] sm:$0xff]  }
 0x111   :  { %v544_v15 = vmax.f32 %v489_v10, 0.0  ;;  %1134 = vmatprep.mubr.bf16.mxu0 %v565_v8  ;;  %v491_v17 = vadd.f32 %v490_v14, %v145_v57  ;;  %v530_v18 = vadd.f32 %v529_v63, %v149_v58  ;;  %v1209_v20 = vmul.f32 %v1187_v59, %v555_v9  ;;  %v1528_v57 = vld [vmem:[#allocation8 + $0x188] sm:$0xff]  }
 0x112   :  { %v531_v23 = vpop.f32.mrf.mxu1  ;;  %v492_v24 = vpop.f32.mrf.mxu0  ;;  %v540_v58 = vmax.f32 %v407_v53, 0.0  ;;  %v554_v59 = vmin.f32 %v542_v55, 6.0 }
 0x113   :  { %1382 = vmatpush3.bf16.msra.mxu0 %v1515_v6  ;;  %1413 = vmatpush3.bf16.msra.mxu1 %v1516_v7  ;;  %v556_v27 = vmin.f32 %v544_v15, 6.0  ;;  %v545_v2 = vmax.f32 %v491_v17, 0.0  ;;  %v546_v28 = vmax.f32 %v530_v18, 0.0  ;;  %v532_v29 = vadd.f32 %v531_v23, %v153_v11 }
 0x114   :  { %1383 = vmatprep.subr.bf16.mxu0 %v1517_v12  ;;  %1414 = vmatprep.subr.bf16.mxu1 %v1649_v60  ;;  %v493_v0 = vpop.f32.mrf.mxu0  ;;  %v533_v31 = vpop.f32.mrf.mxu1  ;;  %v552_v5 = vmin.f32 %v540_v58, 6.0  ;;  %v566_v6 = vpack.c.bf16 %v554_v59, %v554_v59  ;;  %v1221_v17 = vand.u32 127, %v106_v61 }
 0x115   :  { %v1210_v33 = vmul.f32 %v1191_v16, %v556_v27  ;;  %v557_v3 = vmin.f32 %v545_v2, 6.0  ;;  %v558_v34 = vmin.f32 %v546_v28, 6.0  ;;  %v547_v35 = vmax.f32 %v532_v29, 0.0  ;;  %v1275_v16 = vld [vmem:[%s1790_s5] ss:$0 sm:$0xff]  ;;  %s1651_s5 = smov [#allocation10]  }
 0x116   :  { %v534_v37 = vpop.f32.mrf.mxu1  ;;  %v564_v7 = vpack.c.bf16 %v552_v5, %v552_v5  ;;  %vm1222_vm2 = vcmp.eq.s32.totalorder %v1221_v17, 8  ;;  %s1234_s20 = sshll.u32 %s1651_s5, 4  ;;  %s1235_s20 = int_to_ptr.vmem [resolvable:$true] %s1234_s20 }
 0x117   :  { %1384 = vmatpush3.bf16.msra.mxu0 %v1518_v25  ;;  %1415 = vmatpush3.bf16.msra.mxu1 %v1519_v26  ;;  %v1214_v40 = vadd.f32 %v1210_v33, %v1209_v20  ;;  %v1211_v42 = vmul.f32 %v1195_v21, %v557_v3  ;;  %v1212_v43 = vmul.f32 %v1199_v22, %v558_v34  ;;  %v559_v44 = vmin.f32 %v547_v35, 6.0  ;;  %s1612_s21 = scalar_lea.vmem %s1235_s20, 128  ;;  %p1617_p7 = scmp.lt.s32.totalorder %s1235_s20, %s1235_s20 }
 0x118   :  { %1385 = vmatprep.subr.bf16.mxu0 %v1520_v62  ;;  %1416 = vmatprep.subr.bf16.mxu1 %v1649_v60  ;;  %v1332_v27 = vsel %vm1222_vm2, 1.0, %v1649_v60  ;;  %p1613_p6 = scmp.ne.s32.totalorder %s1235_s20, %s1612_s21  ;;  %p1618_p8 = scmp.lt.s32.totalorder %s1612_s21, %s1612_s21 }
 0x119   :  { %v1213_v47 = vmul.f32 %v1203_v30, %v559_v44  ;;  %v1215_v48 = vadd.f32 %v1214_v40, %v1211_v42 }
 0x11a   :  { %p1619_p9 = por %p1618_p8, %p1617_p7 }
 0x11b   :  { %1386 = vmatpush3.bf16.msra.mxu0 %v1521_v38  ;;  %1417 = vmatpush3.bf16.msra.mxu1 %v1522_v39  ;;  %v1216_v52 = vadd.f32 %v1215_v48, %v1212_v43 }
 0x11c   :  { %1387 = vmatprep.subr.bf16.mxu0 %v1523_v46  ;;  %1418 = vmatprep.subr.bf16.mxu1 %v1649_v60  ;;  %p1620_p10 = pnand %p1619_p9, %p1613_p6 }
 0x11d   :  { %v1217_v1 = vadd.f32 %v1216_v52, %v1213_v47 }
 0x11f   :  { %1388 = vmatpush3.bf16.msra.mxu0 %v1524_v50  ;;  %1419 = vmatpush3.bf16.msra.mxu1 %v1525_v51 }
 0x120   :  { %1389 = vmatprep.subr.bf16.mxu0 %v1526_v54  ;;  %1420 = vmatprep.subr.bf16.mxu1 %v1649_v60 }
 0x121   :  { %1218 = vadd.xlane.f32.xlu0 %v1217_v1 }
 0x123   :  { %1390 = vmatpush3.bf16.msra.mxu0 %v1527_v56  ;;  %1421 = vmatpush3.bf16.msra.mxu1 %v1528_v57 }
 0x124   :  { %1391 = vmatprep.subr.bf16.mxu0 %v1529_v41  ;;  %1422 = vmatprep.subr.bf16.mxu1 %v1649_v60 }
 0x127   :  { %1392 = vmatpush3.bf16.msra.mxu0 %v1530_v32  ;;  %1423 = vmatpush3.bf16.msra.mxu1 %v1531_v4 }
 0x12a   :  { %1135 = vmatmul.mubr.bf16.vlgmr.msra.gmra.mxu0 %v564_v7  ;;  %1425 = vmatmul.mubr.bf16.vlgmr.msra.gmra.mxu1 %v566_v6 }
 0x1aa   :  { %v1219_v24 = vpop.xlane.xlu0 %1218 }
 0x1ab   :  { %v1225_v61 = vmul.f32 %v1332_v27, %v1219_v24 }
 0x1ca   :  { %v1349_v8 = vpop.f32.mrf.mxu0  ;;  %v1371_v9 = vpop.f32.mrf.mxu1 }
 0x1cc   :  { %v1350_v10 = vpop.f32.mrf.mxu0  ;;  %v1372_v11 = vpop.f32.mrf.mxu1 }
 0x1cd   :  { %v1351_v15 = vadd.f32 %v1350_v10, %v1349_v8  ;;  %v1373_v19 = vadd.f32 %v1372_v11, %v1371_v9 }
 0x1ce   :  { %v1352_v12 = vpop.f32.mrf.mxu0  ;;  %v1374_v13 = vpop.f32.mrf.mxu1 }
 0x1cf   :  { %v1057_v18 = vadd.f32 %v1351_v15, %v1275_v16 }
 0x1d0   :  { %v1353_v14 = vpop.f32.mrf.mxu0  ;;  %v1375_v63 = vpop.f32.mrf.mxu1 }
 0x1d1   :  { %v1097_v25 = vadd.f32 %v1373_v19, %v1057_v18 }
 0x1ea   :  { %v1393_v20 = vpop.f32.mrf.mxu0  ;;  %v1176_v21 = vpop.f32.mrf.mxu1 }
 0x1ec   :  { %v1394_v22 = vpop.f32.mrf.mxu0  ;;  %v1426_v23 = vpop.f32.mrf.mxu1 }
 0x1ed   :  { %v1395_v26 = vadd.f32 %v1394_v22, %v1393_v20 }
 0x1ee   :  { %v1396_v2 = vpop.f32.mrf.mxu0  ;;  %v1179_v28 = vpop.f32.mrf.mxu1 }
 0x1ef   :  { %v1137_v29 = vadd.f32 %v1395_v26, %v1097_v25 }
 0x1f0   :  { %v1397_v62 = vpop.f32.mrf.mxu0  ;;  %v1427_v30 = vpop.f32.mrf.mxu1 }
 0x1f1   :  { %v1177_v0 = vadd.f32 %v1176_v21, %v1137_v29 }
 0x1f3   :  { %v1226_v31 = vadd.f32 %v1225_v61, %v1177_v0 }
 0x1f5   :  { %1227 = vst [vmem:[#allocation10] sm:$0xff] %v1226_v31 }
 0x1f6   :  { %1623 = shalt.err (!%p1620_p10)
}
 0x1f7   :  { %1237 = dma.vmem_to_hbm [thread:$0]  %s1235_s20, 128, %s1791_s6, [#allocation4]  }
 0x1f8   :  { %1638 = dma.done.wait [#allocation4], 128  }
 0x1f9   :  { %1639 = vsyncadd [#allocation4], 4294967168 }
 0x1fa   :  { %1241 = vsyncpa [#allocation3], 1 }
 0x1fb   :  { %1242 = vsyncpa [#allocation6], 1 }
 0x1fc   :  { %1243 = vsyncpa [#allocation9], 1 }
 0x1fd   :  { %1244 = vsyncpa [#allocation4], 1 }

</bundles_post_ra>
